<compile_context>
chip_gen: v7x
topology: tpu7x:2x2x1
jax: 0.10.0
libtpu: 0.0.40
codegen_flags: <defaults>
</compile_context>

<pallas_src>
import functools
import math

import jax
import jax.numpy as jnp
from jax.experimental import pallas as pl
from jax.experimental.pallas import tpu as pltpu


# ----------------------------------------------------------------------------
# Generation-aware limits / tiling helpers
# ----------------------------------------------------------------------------
def _vmem_capacity_bytes():
    try:
        info = pltpu.get_tpu_info()
        cap = getattr(info, "vmem_capacity_bytes", None)
        if cap:
            return int(cap)
    except Exception:
        pass
    return 64 * 1024 * 1024  # conservative fallback (v7x per-core figure)


@functools.lru_cache(maxsize=None)
def _vmem_limit_bytes():
    # ~2/3 of physical: ~42 MiB on v7x (64 MiB/TC), ~85 MiB on v5e/v6e (128 MiB).
    return int(_vmem_capacity_bytes() * 2 // 3)


@functools.lru_cache(maxsize=None)
def _linear_tile_targets():
    # Bigger tiles on the 128 MiB chips (v5e/v6e) -> closer to HBM roofline; keep 256 on v7x.
    if _vmem_capacity_bytes() >= 96 * 1024 * 1024:
        return 512, 512, 512
    return 256, 256, 512


def _pick_tile(dim, target, align):
    """Largest `align`-aligned divisor of `dim` that is <= target.

    Returns the full extent when dim <= target or when no aligned divisor exists (a
    full-extent block is always a legal TPU block shape)."""
    if dim <= target:
        return dim
    t = (target // align) * align
    while t >= align:
        if dim % t == 0:
            return t
        t -= align
    # TODO(synk): pad the grid (pl.cdiv) with a masked tail block instead of one full block.
    return dim


# ----------------------------------------------------------------------------
# Tiled linear projection kernel:  y = x @ W^T + b   (weight pre-transposed)
# ----------------------------------------------------------------------------
def _linear_kernel(x_ref, wt_ref, b_ref, y_ref, acc_ref):
    @pl.when(pl.program_id(2) == 0)
    def _init():
        acc_ref[...] = jnp.zeros_like(acc_ref)

    # wt_ref holds W^T = (E_in, E_out): contract natural dims, no in-kernel transpose.
    acc_ref[...] += jnp.dot(x_ref[...], wt_ref[...],
                            preferred_element_type=jnp.float32)

    @pl.when(pl.program_id(2) == pl.num_programs(2) - 1)
    def _finalize():
        y_ref[...] = (acc_ref[...] + b_ref[...].astype(jnp.float32)).astype(y_ref.dtype)


def pallas_linear(x, w_t, b, *, out_dtype):
    R, e_in = x.shape
    e_out = w_t.shape[1]
    tm_t, tn_t, tk_t = _linear_tile_targets()
    tm = _pick_tile(R, tm_t, 8)
    tn = _pick_tile(e_out, tn_t, 128)
    tk = _pick_tile(e_in, tk_t, 128)
    grid = (R // tm, e_out // tn, e_in // tk)
    return pl.pallas_call(
        _linear_kernel,
        out_shape=jax.ShapeDtypeStruct((R, e_out), out_dtype),
        grid=grid,
        in_specs=[
            pl.BlockSpec((tm, tk), lambda i, j, k: (i, k)),
            pl.BlockSpec((tk, tn), lambda i, j, k: (k, j)),
            pl.BlockSpec((1, tn), lambda i, j, k: (0, j)),
        ],
        out_specs=pl.BlockSpec((tm, tn), lambda i, j, k: (i, j)),
        scratch_shapes=[pltpu.VMEM((tm, tn), jnp.float32)],
        compiler_params=pltpu.CompilerParams(
            dimension_semantics=("parallel", "parallel", "arbitrary"),
            vmem_limit_bytes=_vmem_limit_bytes()),
    )(x, w_t, b.reshape(1, e_out))


# ----------------------------------------------------------------------------
# Fused attention kernel.
#   q block (Lt, N, E), k/v blocks (S, N, E) straight from the projection layout,
#   output written lane-dense as (Lt, N, E) blocks of the final (L, N, E) rows,
#   optional exact head-averaged weights (N, L, S) in the module's quirky grouping.
# ----------------------------------------------------------------------------
def _attn_body(q_ref, k_ref, v_ref, mask_ref, out_ref, avg_ref, *,
               num_heads, head_dim, scale, compute_dtype, approx_recip):
    H, Hd = num_heads, head_dim
    n_batch = q_ref.shape[1]
    inv_h = 1.0 / H

    if avg_ref is not None:
        avg_ref[...] = jnp.zeros_like(avg_ref)

    mask = None
    if mask_ref is not None:
        mask = mask_ref[...].astype(jnp.float32)            # (Lt, S), added in f32

    # Static loop over (batch n, head h): bounds the live f32 softmax working set to a single
    # (Lt, S) score tile (important for v7x's 64 MiB VMEM) and keeps every Ref index static.
    for n in range(n_batch):
        for h in range(H):
            sl = slice(h * Hd, (h + 1) * Hd)
            q_nh = q_ref[:, n, sl] * scale                  # (Lt, Hd): scale q, not scores
            k_nh = k_ref[:, n, sl]                          # (S, Hd)
            v_nh = v_ref[:, n, sl]                          # (S, Hd)

            s = jnp.einsum("ld,sd->ls", q_nh, k_nh,
                           preferred_element_type=jnp.float32)   # (Lt, S) f32 on the MXU
            if mask is not None:
                s = s + mask

            m = jnp.max(s, axis=-1, keepdims=True)
            e = jnp.exp(s - m)
            den = jnp.sum(e, axis=-1, keepdims=True)
            if approx_recip:
                w = e * pl.reciprocal(den, approx=True)     # EUP slot, not a VALU divide
            else:
                w = e / den
            # dropout(p) on the weights is the identity at inference time.

            attn = jnp.dot(w.astype(compute_dtype), v_nh,
                           preferred_element_type=jnp.float32)   # (Lt, Hd)
            out_ref[:, n, sl] = attn.astype(out_ref.dtype)

            if avg_ref is not None:
                # attn_weights.view(H, N, L, S).mean(0): flat b = n*H + h lands in avg
                # column j = b % N -- exact reproduction of the module's regroup.
                avg_ref[(n * H + h) % n_batch] += w * inv_h


def _make_attn_kernel(has_mask, need_weights, **body_kwargs):
    def kernel(*refs):
        q_ref, k_ref, v_ref = refs[:3]
        pos = 3
        mask_ref = None
        if has_mask:
            mask_ref = refs[pos]
            pos += 1
        out_ref = refs[pos]
        avg_ref = refs[pos + 1] if need_weights else None
        _attn_body(q_ref, k_ref, v_ref, mask_ref, out_ref, avg_ref, **body_kwargs)
    return kernel


def pallas_attention(q, k, v, attn_mask, *, embed_dim, num_heads,
                     q_col=0, k_col=0, v_col=0,
                     compute_dtype=jnp.bfloat16, need_weights=True,
                     approx_recip=True, lt_target=256):
    """q: (L, N, *), k/v: (S, N, *) in the projection's natural layout; the E-wide column slab
    used for q/k/v is selected with *_col block indices (lets a packed (L, N, 3E) QKV tensor be
    consumed with zero slice copies)."""
    E, H = embed_dim, num_heads
    Hd = E // H
    L, N, _ = q.shape
    S = k.shape[0]

    Lt = _pick_tile(L, lt_target, 8)     # 256 fills the 2x256 MXU M-dim on v6e/v7x
    if L // Lt < 2:                      # v7x megacore: keep >= 2 parallel steps when possible
        Lt = _pick_tile(L, max(8, L // 2), 8)
    grid = (L // Lt,)
    scale = 1.0 / math.sqrt(Hd)

    in_specs = [
        pl.BlockSpec((Lt, N, E), lambda lt, c=q_col: (lt, 0, c)),
        pl.BlockSpec((S, N, E), lambda lt, c=k_col: (0, 0, c)),
        pl.BlockSpec((S, N, E), lambda lt, c=v_col: (0, 0, c)),
    ]
    operands = [q, k, v]
    has_mask = attn_mask is not None
    if has_mask:
        in_specs.append(pl.BlockSpec((Lt, S), lambda lt: (lt, 0)))
        # compute-dtype mask halves the per-step mask DMA (exact for 0 / -inf causal masks);
        # the add still happens against f32 scores.
        operands.append(attn_mask.astype(compute_dtype))

    out_spec = pl.BlockSpec((Lt, N, E), lambda lt: (lt, 0, 0))
    if need_weights:
        out_shape = (jax.ShapeDtypeStruct((L, N, E), compute_dtype),
                     jax.ShapeDtypeStruct((N, L, S), jnp.float32))
        out_specs = (out_spec, pl.BlockSpec((N, Lt, S), lambda lt: (0, lt, 0)))
    else:
        out_shape = jax.ShapeDtypeStruct((L, N, E), compute_dtype)
        out_specs = out_spec

    kernel = _make_attn_kernel(
        has_mask, need_weights,
        num_heads=H, head_dim=Hd, scale=scale,
        compute_dtype=compute_dtype, approx_recip=approx_recip)

    result = pl.pallas_call(
        kernel,
        out_shape=out_shape,
        grid=grid,
        in_specs=in_specs,
        out_specs=out_specs,
        compiler_params=pltpu.CompilerParams(
            dimension_semantics=("parallel",),
            vmem_limit_bytes=_vmem_limit_bytes()),
    )(*operands)

    if need_weights:
        out, avg = result
        return out, avg
    return result, None


# ----------------------------------------------------------------------------
# One-time weight preparation (hoisted out of the forward) + full module forward.
# ----------------------------------------------------------------------------
def prepare_params(params, compute_dtype=jnp.bfloat16):
    """Pre-transposed (E_in, E_out) weights in the MXU compute dtype plus a packed (E, 3E)
    QKV weight/bias for the self-attention fast path."""
    cdt = compute_dtype
    wq_t = params["wq"].T.astype(cdt)
    wk_t = params["wk"].T.astype(cdt)
    wv_t = params["wv"].T.astype(cdt)
    return {
        "wq_t": wq_t, "bq": params["bq"],
        "wk_t": wk_t, "bk": params["bk"],
        "wv_t": wv_t, "bv": params["bv"],
        "wqkv_t": jnp.concatenate([wq_t, wk_t, wv_t], axis=1),
        "bqkv": jnp.concatenate([params["bq"], params["bk"], params["bv"]]),
        "wo_t": params["wo"].T.astype(cdt), "bo": params["bo"],
        "compute_dtype": cdt,
    }


def multihead_attention_forward(prepared, query, key, value, num_heads,
                                attn_mask=None, need_weights=True, approx_recip=True):
    L, N, E = query.shape
    S = key.shape[0]
    cdt = prepared["compute_dtype"]

    # ---- Q/K/V projections (tiled Pallas matmuls, f32 accumulation) --------------------
    # Self-attention fast path: one packed (E, 3E) projection reads the activation from HBM
    # once; the attention kernel selects q/k/v column slabs via block indices (no slicing).
    packed = (query is key) and (key is value) and (E % 128 == 0)
    if packed:
        qkv = pallas_linear(query.reshape(L * N, E).astype(cdt),
                            prepared["wqkv_t"], prepared["bqkv"], out_dtype=cdt)
        qkv = qkv.reshape(L, N, 3 * E)
        q_arr = k_arr = v_arr = qkv
        q_col, k_col, v_col = 0, 1, 2
    else:
        q_arr = pallas_linear(query.reshape(L * N, E).astype(cdt),
                              prepared["wq_t"], prepared["bq"], out_dtype=cdt).reshape(L, N, E)
        k_arr = pallas_linear(key.reshape(S * N, E).astype(cdt),
                              prepared["wk_t"], prepared["bk"], out_dtype=cdt).reshape(S, N, E)
        v_arr = pallas_linear(value.reshape(S * N, E).astype(cdt),
                              prepared["wv_t"], prepared["bv"], out_dtype=cdt).reshape(S, N, E)
        q_col = k_col = v_col = 0

    # ---- Fused attention: no wrapper head-split transposes, lane-dense (L, N, E) output ----
    attn_rows, avg = pallas_attention(
        q_arr, k_arr, v_arr, attn_mask,
        embed_dim=E, num_heads=num_heads,
        q_col=q_col, k_col=k_col, v_col=v_col,
        compute_dtype=cdt, need_weights=need_weights, approx_recip=approx_recip)

    # Output projection directly on the (L*N, E) rows the attention kernel produced.
    out = pallas_linear(attn_rows.reshape(L * N, E),
                        prepared["wo_t"], prepared["bo"], out_dtype=jnp.float32)
    return out.reshape(L, N, E), avg


# ----------------------------------------------------------------------------
# Pure-JAX reference (mirrors the PyTorch forward exactly) for verification.
# ----------------------------------------------------------------------------
def reference_forward(params, query, key, value, num_heads, attn_mask=None):
    L, N, E = query.shape
    S = key.shape[0]
    H = num_heads
    Hd = E // H

    q = (query @ params["wq"].T + params["bq"]).reshape(L, N * H, Hd).transpose(1, 0, 2)
    k = (key @ params["wk"].T + params["bk"]).reshape(S, N * H, Hd).transpose(1, 0, 2)
    v = (value @ params["wv"].T + params["bv"]).reshape(S, N * H, Hd).transpose(1, 0, 2)

    scores = jnp.einsum("bld,bsd->bls", q, k) / (Hd ** 0.5)
    if attn_mask is not None:
        scores = scores + attn_mask[None]
    w = jax.nn.softmax(scores, axis=-1)
    attn = jnp.einsum("bls,bsd->bld", w, v)
    attn = attn.transpose(1, 0, 2).reshape(L, N, E)
    out = attn @ params["wo"].T + params["bo"]
    avg = w.reshape(H, N, L, S).mean(axis=0)
    return out, avg


def make_params(key, embed_dim):
    E = embed_dim
    ks = jax.random.split(key, 4)
    xavier = math.sqrt(6.0 / (E + E))          # xavier_uniform for square weights
    lin = 1.0 / math.sqrt(E)                   # default-ish init for out_proj
    return {
        "wq": jax.random.uniform(ks[0], (E, E), jnp.float32, -xavier, xavier),
        "bq": jnp.zeros((E,), jnp.float32),
        "wk": jax.random.uniform(ks[1], (E, E), jnp.float32, -xavier, xavier),
        "bk": jnp.zeros((E,), jnp.float32),
        "wv": jax.random.uniform(ks[2], (E, E), jnp.float32, -xavier, xavier),
        "bv": jnp.zeros((E,), jnp.float32),
        "wo": jax.random.uniform(ks[3], (E, E), jnp.float32, -lin, lin),
        "bo": jnp.zeros((E,), jnp.float32),
    }


if __name__ == "__main__":
    L, S, N, E, H = 8, 16, 2, 128, 4   # tgt_len, src_len, batch, embed_dim, num_heads

    root = jax.random.PRNGKey(0)
    kp, kq, kk, kv = jax.random.split(root, 4)
    params = make_params(kp, E)

    query = jax.random.normal(kq, (L, N, E), jnp.float32)
    key_t = jax.random.normal(kk, (S, N, E), jnp.float32)
    value = jax.random.normal(kv, (S, N, E), jnp.float32)

    causal = jnp.where(jnp.arange(S)[None, :] <= jnp.arange(L)[:, None],
                       0.0, -jnp.inf).astype(jnp.float32)

    # --- f32 path, cross-attention, no mask, with averaged weights ----------------------
    prep_f32 = prepare_params(params, compute_dtype=jnp.float32)
    out, avg = multihead_attention_forward(prep_f32, query, key_t, value, H)
    out = jax.block_until_ready(out)
    avg = jax.block_until_ready(avg)
    ref_out, ref_avg = reference_forward(params, query, key_t, value, H)
    assert out.shape == (L, N, E)
    assert avg.shape == (N, L, S)
    # approx=True EUP reciprocal in the softmax -> ~2e-4 relative; allow 5e-3.
    assert jnp.allclose(out, ref_out, rtol=5e-3, atol=5e-3)
    assert jnp.allclose(avg, ref_avg, rtol=5e-3, atol=5e-3)

    # --- f32 path, additive causal mask, need_weights=False (no avg writeback) ----------
    out_m, avg_none = multihead_attention_forward(prep_f32, query, key_t, value, H,
                                                  attn_mask=causal, need_weights=False)
    out_m = jax.block_until_ready(out_m)
    ref_out_m, _ = reference_forward(params, query, key_t, value, H, attn_mask=causal)
    assert avg_none is None
    assert jnp.allclose(out_m, ref_out_m, rtol=5e-3, atol=5e-3)

    # --- bf16 default path, SELF-attention (packed (E,3E) QKV projection), causal mask ---
    prep_bf16 = prepare_params(params)                      # compute_dtype defaults to bf16
    causal_sq = jnp.where(jnp.arange(L)[None, :] <= jnp.arange(L)[:, None],
                          0.0, -jnp.inf).astype(jnp.float32)
    out_s, avg_s = multihead_attention_forward(prep_bf16, query, query, query, H,
                                               attn_mask=causal_sq)
    out_s = jax.block_until_ready(out_s)
    ref_out_s, ref_avg_s = reference_forward(params, query, query, query, H,
                                             attn_mask=causal_sq)
    assert float(jnp.max(jnp.abs(out_s.astype(jnp.float32) - ref_out_s))) < 0.35
    assert float(jnp.max(jnp.abs(avg_s.astype(jnp.float32) - ref_avg_s))) < 0.08

    print("KERNEL_OK")
</pallas_src>

<mosaic_0001>
module attributes {stable_mosaic.version = 11 : i64} {
  func.func @_linear_kernel(%arg0: i32, %arg1: i32, %arg2: i32, %arg3: memref<16x128xf32, #tpu.memory_space<vmem>>, %arg4: memref<128x128xf32, #tpu.memory_space<vmem>>, %arg5: memref<1x128xf32, #tpu.memory_space<vmem>>, %arg6: memref<16x128xf32, #tpu.memory_space<vmem>>, %arg7: memref<16x128xf32, #tpu.memory_space<vmem>>) attributes {dimension_semantics = [#tpu.dimension_semantics<parallel>, #tpu.dimension_semantics<parallel>, #tpu.dimension_semantics<arbitrary>], iteration_bounds = array<i64: 1, 1, 1>, scalar_prefetch = 0 : i64, scratch_operands = 1 : i64, tpu.core_type = #tpu.core_type<tc>, window_params = [{transform_indices = @transform_0, window_bounds = array<i64: 16, 128>}, {transform_indices = @transform_1, window_bounds = array<i64: 128, 128>}, {transform_indices = @transform_2, window_bounds = array<i64: 1, 128>}, {transform_indices = @transform_3, window_bounds = array<i64: 16, 128>}]} {
    %c0_i32 = arith.constant 0 : i32
    %0 = arith.cmpi eq, %arg2, %c0_i32 : i32
    %1 = arith.extui %0 : i1 to i32
    %c0_i32_0 = arith.constant 0 : i32
    %2 = arith.cmpi ne, %1, %c0_i32_0 : i32
    scf.if %2 {
      %cst_10 = arith.constant 0.000000e+00 : f32
      %12 = vector.broadcast %cst_10 : f32 to vector<16x128xf32>
      %c0_11 = arith.constant 0 : index
      %c0_12 = arith.constant 0 : index
      %13 = vector.load %arg7[%c0_11, %c0_12] : memref<16x128xf32, #tpu.memory_space<vmem>>, vector<16x128xf32>
      tpu.vector_store %arg7[%c0_11, %c0_12], %12 {strides = array<i32>} : memref<16x128xf32, #tpu.memory_space<vmem>>, vector<16x128xf32>,
    } else {
    }
    %c0 = arith.constant 0 : index
    %c0_1 = arith.constant 0 : index
    %3 = vector.load %arg7[%c0, %c0_1] : memref<16x128xf32, #tpu.memory_space<vmem>>, vector<16x128xf32>
    %c0_2 = arith.constant 0 : index
    %c0_3 = arith.constant 0 : index
    %4 = vector.load %arg3[%c0_2, %c0_3] : memref<16x128xf32, #tpu.memory_space<vmem>>, vector<16x128xf32>
    %c0_4 = arith.constant 0 : index
    %c0_5 = arith.constant 0 : index
    %5 = vector.load %arg4[%c0_4, %c0_5] : memref<128x128xf32, #tpu.memory_space<vmem>>, vector<128x128xf32>
    %cst = arith.constant dense<0.000000e+00> : vector<16x128xf32>
    %6 = tpu.matmul %4, %5, %cst {dimension_numbers = #tpu.dot_dimension_numbers<[1], [0], [0], [1], [0, 0, 1, 1], [], []>} : vector<16x128xf32>, vector<128x128xf32>, vector<16x128xf32> -> vector<16x128xf32>
    %7 = arith.addf %3, %6 : vector<16x128xf32>
    %c0_6 = arith.constant 0 : index
    %c0_7 = arith.constant 0 : index
    %8 = vector.load %arg7[%c0_6, %c0_7] : memref<16x128xf32, #tpu.memory_space<vmem>>, vector<16x128xf32>
    tpu.vector_store %arg7[%c0_6, %c0_7], %7 {strides = array<i32>} : memref<16x128xf32, #tpu.memory_space<vmem>>, vector<16x128xf32>,
    %c0_i32_8 = arith.constant 0 : i32
    %9 = arith.cmpi eq, %arg2, %c0_i32_8 : i32
    %10 = arith.extui %9 : i1 to i32
    %c0_i32_9 = arith.constant 0 : i32
    %11 = arith.cmpi ne, %10, %c0_i32_9 : i32
    scf.if %11 {
      %c0_10 = arith.constant 0 : index
      %c0_11 = arith.constant 0 : index
      %12 = vector.load %arg7[%c0_10, %c0_11] : memref<16x128xf32, #tpu.memory_space<vmem>>, vector<16x128xf32>
      %c0_12 = arith.constant 0 : index
      %c0_13 = arith.constant 0 : index
      %13 = vector.load %arg5[%c0_12, %c0_13] : memref<1x128xf32, #tpu.memory_space<vmem>>, vector<1x128xf32>
      %14 = vector.broadcast %13 : vector<1x128xf32> to vector<16x128xf32>
      %15 = arith.addf %12, %14 : vector<16x128xf32>
      %c0_14 = arith.constant 0 : index
      %c0_15 = arith.constant 0 : index
      %16 = vector.load %arg6[%c0_14, %c0_15] : memref<16x128xf32, #tpu.memory_space<vmem>>, vector<16x128xf32>
      tpu.vector_store %arg6[%c0_14, %c0_15], %15 {strides = array<i32>} : memref<16x128xf32, #tpu.memory_space<vmem>>, vector<16x128xf32>,
    } else {
    }
    return
  }
  func.func @transform_0(%arg0: i32, %arg1: i32, %arg2: i32) -> (i32, i32) {
    %c0_i32 = arith.constant 0 : i32
    return %arg0, %arg2 : i32, i32
  }
  func.func @transform_1(%arg0: i32, %arg1: i32, %arg2: i32) -> (i32, i32) {
    %c0_i32 = arith.constant 0 : i32
    return %arg2, %arg1 : i32, i32
  }
  func.func @transform_2(%arg0: i32, %arg1: i32, %arg2: i32) -> (i32, i32) {
    %c0_i32 = arith.constant 0 : i32
    %c0_i32_0 = arith.constant 0 : i32
    return %c0_i32, %arg1 : i32, i32
  }
  func.func @transform_3(%arg0: i32, %arg1: i32, %arg2: i32) -> (i32, i32) {
    %c0_i32 = arith.constant 0 : i32
    return %arg0, %arg1 : i32, i32
  }
}

</mosaic_0001>

<bundles_post_ra>
// kernel: tpu_custom_call.1
= control target key start
LH: loop header
LB: loop body
LE: loop exit
PB: predicated region body
PF: predicated region fallthrough
CT: control target
= control target key end

     0   :  { %8 = vsyncpa [#allocation4], 0  ;;  %s418_s0 = inlined_call_operand.hbm [shape: f32[16,128], index: 0, kind: input, shape index: {}]   ;;  %s419_s1 = inlined_call_operand.hbm [shape: f32[128,128], index: 1, kind: input, shape index: {}]   ;;  %s420_s2 = inlined_call_operand.vmem [shape: f32[1,128], index: 2, kind: input, shape index: {}]   ;;  %s421_s3 = inlined_call_operand.hbm [shape: f32[16,128], index: 3, kind: output, shape index: {}]  }
   0x1   :  { %9 = vsyncpa [#allocation7], 0 }
   0x2   :  { %10 = vsyncpa [#allocation5], 0  ;;  %s345_s12 = smov [#allocation3]   ;;  %s273_s16 = scalar_lea.hbm %s418_s0, 256 }
   0x3   :  { %s16_s13 = sshll.u32 %s345_s12, 4  ;;  %p274_p0 = scmp.ne.s32.totalorder %s418_s0, %s273_s16  ;;  %s17_s13 = int_to_ptr.vmem [resolvable:$true] %s16_s13 }
   0x4   :  { %p277_p1 = scmp.lt.u32.totalorder %s273_s16, %s418_s0 }
   0x6   :  { %p279_p2 = pnand %p277_p1, %p274_p0 }
   0x8   :  { %282 = shalt.err (!%p279_p2)
}
   0x9   :  { %s283_s21 = scalar_lea.vmem %s17_s13, 256  ;;  %p288_p4 = scmp.lt.s32.totalorder %s17_s13, %s17_s13 }
   0xa   :  { %p284_p3 = scmp.ne.s32.totalorder %s17_s13, %s283_s21  ;;  %p289_p5 = scmp.lt.s32.totalorder %s283_s21, %s283_s21 }
   0xc   :  { %p290_p6 = por %p289_p5, %p288_p4 }
   0xe   :  { %p291_p7 = pnand %p290_p6, %p284_p3 }
  0x10   :  { %294 = shalt.err (!%p291_p7)
}
  0x11   :  { %s346_s22 = smov 128   ;;  %s347_s23 = smov 8  }
  0x12   :  { %22 = dma.hbm_to_vmem [thread:$0]  %s418_s0, 256, %s17_s13, [#allocation4], %s346_s22, %s346_s22, %s347_s23  }
  0x13   :  { %s348_s26 = smov [#allocation6]   ;;  %s295_s30 = scalar_lea.hbm %s419_s1, 2048 }
  0x14   :  { %s28_s27 = sshll.u32 %s348_s26, 4  ;;  %p296_p8 = scmp.ne.s32.totalorder %s419_s1, %s295_s30  ;;  %s29_s27 = int_to_ptr.vmem [resolvable:$true] %s28_s27 }
  0x15   :  { %p299_p9 = scmp.lt.u32.totalorder %s295_s30, %s419_s1 }
  0x17   :  { %p301_p10 = pnand %p299_p9, %p296_p8 }
  0x19   :  { %304 = shalt.err (!%p301_p10)
}
  0x1a   :  { %s305_s8 = scalar_lea.vmem %s29_s27, 2048  ;;  %p310_p12 = scmp.lt.s32.totalorder %s29_s27, %s29_s27 }
  0x1b   :  { %p306_p11 = scmp.ne.s32.totalorder %s29_s27, %s305_s8  ;;  %p311_p13 = scmp.lt.s32.totalorder %s305_s8, %s305_s8 }
  0x1d   :  { %p312_p0 = por %p311_p13, %p310_p12 }
  0x1f   :  { %p313_p1 = pnand %p312_p0, %p306_p11 }
  0x21   :  { %316 = shalt.err (!%p313_p1)
}
  0x22   :  { %34 = dma.hbm_to_vmem [thread:$0]  %s419_s1, 2048, %s29_s27, [#allocation7], %s346_s22, %s346_s22, %s347_s23  }
  0x23   :  { %339 = dma.done.wait [#allocation4], 256  }
  0x24   :  { %340 = vsyncadd [#allocation4], 4294967040 }
  0x25   :  { %341 = dma.done.wait [#allocation7], 2048  }
  0x26   :  { %342 = vsyncadd [#allocation7], 4294965248  ;;  %v53_v0 = vld [vmem:[#allocation6] sm:$0xff]  ;;  %v54_v1 = vld [vmem:[#allocation6 + $0x8] sm:$0xff]  ;;  %s349_s11 = smov [#allocation8]  }
  0x27   :  { %v55_v2 = vld [vmem:[#allocation6 + $0x10] sm:$0xff]  ;;  %v236_v3 = vpack.c.bf16 %v54_v1, %v53_v0  ;;  %v56_v4 = vld [vmem:[#allocation6 + $0x18] sm:$0xff]  ;;  %v57_v6 = vld [vmem:[#allocation6 + $0x20] sm:$0xff]  ;;  %s169_s12 = sshll.u32 %s349_s11, 4  ;;  %s170_s12 = int_to_ptr.vmem [resolvable:$true] %s169_s12 }
  0x28   :  { %v240_v5 = vpack.c.bf16 %v56_v4, %v55_v2  ;;  %v58_v7 = vld [vmem:[#allocation6 + $0x28] sm:$0xff]  ;;  %v51_v9 = vld [vmem:[#allocation3] sm:$0xff]  ;;  %v60_v11 = vld [vmem:[#allocation6 + $0x38] sm:$0xff]  ;;  %s317_s13 = scalar_lea.vmem %s170_s12, 256  ;;  %p322_p3 = scmp.lt.s32.totalorder %s170_s12, %s170_s12 }
  0x29   :  { %237 = vmatprep.subr.bf16.mxu0 %v236_v3  ;;  %v244_v8 = vpack.c.bf16 %v58_v7, %v57_v6  ;;  %v59_v10 = vld [vmem:[#allocation6 + $0x30] sm:$0xff]  ;;  %233 = vmatprep.mubr.f32.mxu0 %v51_v9  ;;  %v61_v13 = vld [vmem:[#allocation6 + $0x40] sm:$0xff]  ;;  %v62_v14 = vld [vmem:[#allocation6 + $0x48] sm:$0xff]  ;;  %p318_p2 = scmp.ne.s32.totalorder %s170_s12, %s317_s13  ;;  %p323_p4 = scmp.lt.s32.totalorder %s317_s13, %s317_s13 }
  0x2a   :  { %239 = vmatpush3.bf16.msra.mxu0 %v236_v3  ;;  %v248_v12 = vpack.c.bf16 %v60_v11, %v59_v10  ;;  %v252_v15 = vpack.c.bf16 %v62_v14, %v61_v13  ;;  %v63_v16 = vld [vmem:[#allocation6 + $0x50] sm:$0xff]  ;;  %v64_v17 = vld [vmem:[#allocation6 + $0x58] sm:$0xff]  ;;  %v65_v19 = vld [vmem:[#allocation6 + $0x60] sm:$0xff] }
  0x2b   :  { %241 = vmatprep.subr.bf16.mxu0 %v240_v5  ;;  %v256_v18 = vpack.c.bf16 %v64_v17, %v63_v16  ;;  %v66_v20 = vld [vmem:[#allocation6 + $0x68] sm:$0xff]  ;;  %v67_v22 = vld [vmem:[#allocation6 + $0x70] sm:$0xff]  ;;  %v68_v23 = vld [vmem:[#allocation6 + $0x78] sm:$0xff]  ;;  %p324_p5 = por %p323_p4, %p322_p3 }
  0x2c   :  { %v260_v21 = vpack.c.bf16 %v66_v20, %v65_v19  ;;  %v264_v24 = vpack.c.bf16 %v68_v23, %v67_v22  ;;  %v52_v25 = vld [vmem:[#allocation3 + $0x8] sm:$0xff]  ;;  %v182_v26 = vld [vmem:[%s420_s2] ss:$0 sm:$0xff] }
  0x2d   :  { %p325_p6 = pnand %p324_p5, %p318_p2 }
  0x2e   :  { %243 = vmatpush3.bf16.msra.mxu0 %v240_v5 }
  0x2f   :  { %245 = vmatprep.subr.bf16.mxu0 %v244_v8 }
  0x32   :  { %247 = vmatpush3.bf16.msra.mxu0 %v244_v8 }
  0x33   :  { %249 = vmatprep.subr.bf16.mxu0 %v248_v12 }
  0x36   :  { %251 = vmatpush3.bf16.msra.mxu0 %v248_v12 }
  0x37   :  { %253 = vmatprep.subr.bf16.mxu0 %v252_v15 }
  0x3a   :  { %255 = vmatpush3.bf16.msra.mxu0 %v252_v15 }
  0x3b   :  { %257 = vmatprep.subr.bf16.mxu0 %v256_v18 }
  0x3e   :  { %259 = vmatpush3.bf16.msra.mxu0 %v256_v18 }
  0x3f   :  { %261 = vmatprep.subr.bf16.mxu0 %v260_v21 }
  0x42   :  { %263 = vmatpush3.bf16.msra.mxu0 %v260_v21 }
  0x43   :  { %265 = vmatprep.subr.bf16.mxu0 %v264_v24 }
  0x46   :  { %267 = vmatpush3.bf16.msra.mxu0 %v264_v24 }
  0x49   :  { %234 = vmatmul.mubr.f32.vlgmr.msra.gmra.mrb[0].mxu0 %v52_v25 }
 0x11c   :  { %v235_v27 = vpop.f32.mrb[0].mxu0 }
 0x11d   :  { %v161_v28 = vadd.f32 %v235_v27, %v182_v26  ;;  %v135_v29 = vpop.f32.mrb[1].mxu0 }
 0x11e   :  { %v160_v30 = vadd.f32 %v182_v26, %v135_v29 }
 0x11f   :  { %163 = vst [vmem:[#allocation8 + $0x8] sm:$0xff] %v161_v28 }
 0x120   :  { %162 = vst [vmem:[#allocation8] sm:$0xff] %v160_v30 }
 0x121   :  { %328 = shalt.err (!%p325_p6)
}
 0x122   :  { %s329_s2 = scalar_lea.hbm %s421_s3, 256 }
 0x123   :  { %p330_p7 = scmp.ne.s32.totalorder %s421_s3, %s329_s2  ;;  %p333_p8 = scmp.lt.u32.totalorder %s329_s2, %s421_s3 }
 0x125   :  { %p335_p9 = pnand %p333_p8, %p330_p7 }
 0x127   :  { %338 = shalt.err (!%p335_p9)
}
 0x128   :  { %175 = dma.vmem_to_hbm [thread:$0]  %s170_s12, 256, %s421_s3, [#allocation5], %s346_s22, %s346_s22, %s347_s23  }
 0x129   :  { %343 = dma.done.wait [#allocation5], 256  }
 0x12a   :  { %344 = vsyncadd [#allocation5], 4294967040 }
 0x12b   :  { %179 = vsyncpa [#allocation4], 1 }
 0x12c   :  { %180 = vsyncpa [#allocation7], 1 }
 0x12d   :  { %181 = vsyncpa [#allocation5], 1 }

</bundles_post_ra>
